<compile_context>
chip_gen: v7x
topology: tpu7x:2x2x1
jax: 0.10.0
libtpu: 0.0.40
codegen_flags: <defaults>
</compile_context>

<pallas_src>
import functools

import jax
import jax.numpy as jnp
from jax import lax
from jax.experimental import pallas as pl
from jax.experimental.pallas import tpu as pltpu


def _resblock_kernel(H, W, HW, HWp, C, M_pad, PADH, CHUNK, Nb, res_scale,
                     x_ref, w1_ref, b1_ref, a1_ref,
                     w2_ref, b2_ref, a2_ref,
                     w3_ref, b3_ref,
                     o_ref,
                     y1p_ref, patch_ref):
  """One block of Nb images per grid step.

  x_ref:  (Nb, C, HWp) f32     channels on sublanes, flattened H*W on lanes.
  w1_ref: (M_pad, C)           b1_ref: (M_pad, 1)    a1_ref: (1,1) SMEM slope.
  w2_ref: (M_pad, 9*M_pad)     3x3 weights, im2col column order.
  w3_ref: (C, M_pad)           b3_ref: (C, 1).
  o_ref:  (Nb, C, HWp) f32.
  y1p_ref:   (M_pad, HWp + 2*PADH)  halo-padded mid activations (matmul dtype).
  patch_ref: (9*M_pad, CHUNK)       im2col patch chunk (matmul dtype).
  """
  cdtype = w1_ref.dtype
  n_chunks = HWp // CHUNK

  # Re-zero the halo strips every grid step (scratch persists across steps and
  # megacore shards).  PADH is a 128 multiple -> aligned, unmasked stores.
  halo_zero = jnp.zeros((M_pad, PADH), cdtype)
  y1p_ref[:, :PADH] = halo_zero
  y1p_ref[:, PADH + HWp:] = halo_zero

  a1 = a1_ref[0, 0]
  a2 = a2_ref[0, 0]

  @pl.loop(0, Nb)
  def _per_image(i):
    # ---- conv1x1 (C -> M) + PReLU, whole image ------------------------------
    xi = x_ref[i]                                              # (C, HWp) f32
    y1 = jnp.dot(w1_ref[...], xi.astype(cdtype),
                 preferred_element_type=jnp.float32) + b1_ref[...]
    y1 = jnp.where(y1 > 0, y1, a1 * y1)                        # (M_pad, HWp)
    if HWp != HW:
      # Zero the padded spatial tail so 3x3 taps of the last real row read 0.
      lane = lax.broadcasted_iota(jnp.int32, (1, HWp), 1)
      y1 = jnp.where(lane < HW, y1, 0.0)
    y1p_ref[:, PADH:PADH + HWp] = y1.astype(cdtype)            # aligned store

    # ---- conv3x3 (M -> M, padding=1): chunked im2col matmul -----------------
    for c in range(n_chunks):
      c0 = c * CHUNK
      # Column index of each lane in this chunk (hoisted out of the tap loop).
      w_idx = (c0 + lax.broadcasted_iota(jnp.int32, (1, CHUNK), 1)) % W
      left_ok = w_idx >= 1                 # tap needs column-1 >= 0
      right_ok = w_idx <= W - 2            # tap needs column+1 <= W-1

      for kh in range(3):                  # static unroll: 9 shifted tap reads
        for kw in range(3):
          k = kh * 3 + kw
          s = (kh - 1) * W + (kw - 1)      # flattened spatial shift of the tap
          tap = y1p_ref[:, PADH + c0 + s:PADH + c0 + s + CHUNK]
          if kw == 0:
            tap = jnp.where(left_ok, tap, jnp.zeros_like(tap))
          elif kw == 2:
            tap = jnp.where(right_ok, tap, jnp.zeros_like(tap))
          patch_ref[k * M_pad:(k + 1) * M_pad, :] = tap        # aligned rows

      y2 = jnp.dot(w2_ref[...], patch_ref[...],
                   preferred_element_type=jnp.float32) + b2_ref[...]
      y2 = jnp.where(y2 > 0, y2, a2 * y2)                      # (M_pad, CHUNK)

      # ---- conv1x1 (M -> C) + fused residual --------------------------------
      y3 = jnp.dot(w3_ref[...], y2.astype(cdtype),
                   preferred_element_type=jnp.float32) + b3_ref[...]
      o_ref[i, :, c0:c0 + CHUNK] = (
          x_ref[i, :, c0:c0 + CHUNK] + res_scale * y3).astype(o_ref.dtype)


def resblock_pallas(x_nchw, params, res_scale=0.1, matmul_dtype=jnp.bfloat16):
  """x_nchw: (N, C, H, W) float32, matching the PyTorch module's input layout."""
  w1, b1, a1, w2, b2, a2, w3, b3 = params
  N, C, H, W = x_nchw.shape
  assert C % 4 == 0, "n_feats must be divisible by 4"
  assert W >= 2 and H >= 1
  M = C // 4
  HW = H * W

  f32 = jnp.float32
  cdtype = jnp.dtype(matmul_dtype)
  cs = cdtype.itemsize
  sub = 16 if cdtype == jnp.dtype(jnp.bfloat16) else 8

  HWp = ((HW + 127) // 128) * 128            # lane-dense flattened spatial axis
  PADH = ((W + 1 + 127) // 128) * 128        # halo width (>= W+1, 128-aligned)
  M_pad = ((M + sub - 1) // sub) * sub       # sublane-aligned mid channels

  # Lane chunk for the im2col matmul: largest 128-multiple divisor of HWp
  # (capped) so patch scratch stays bounded for large images.
  k128 = HWp // 128
  chunk_mult = 1
  for d in range(1, k128 + 1):
    if k128 % d == 0 and d * 128 <= 4096:
      chunk_mult = d
  CHUNK = chunk_mult * 128

  # Images per grid step (amortize per-step overhead), bounded by a VMEM budget
  # for the double-buffered x/out blocks.
  Nb = 1
  for nb in range(1, min(N, 8) + 1):
    if N % nb == 0 and 4 * nb * C * HWp * 4 <= (8 << 20):
      Nb = nb

  # --- host-side data prep (free reshapes; zero-pad only when needed) --------
  x = x_nchw.reshape(N, C, HW).astype(f32)
  if HWp != HW:
    x = jnp.pad(x, ((0, 0), (0, 0), (0, HWp - HW)))

  w1_k = jnp.zeros((M_pad, C), f32).at[:M].set(
      w1.reshape(M, C).astype(f32)).astype(cdtype)
  w2_p = jnp.zeros((M_pad, M_pad, 3, 3), f32).at[:M, :M].set(w2.astype(f32))
  # (O, I, KH, KW) -> (O, KH, KW, I) -> (O, 9*M_pad); column (kh*3+kw)*M_pad+i.
  w2_k = jnp.transpose(w2_p, (0, 2, 3, 1)).reshape(M_pad, 9 * M_pad).astype(cdtype)
  w3_k = jnp.zeros((C, M_pad), f32).at[:, :M].set(
      w3.reshape(C, M).astype(f32)).astype(cdtype)
  b1_k = jnp.zeros((M_pad, 1), f32).at[:M, 0].set(b1.astype(f32))
  b2_k = jnp.zeros((M_pad, 1), f32).at[:M, 0].set(b2.astype(f32))
  b3_k = b3.reshape(C, 1).astype(f32)
  a1_s = jnp.asarray(a1, f32).reshape(1, 1)
  a2_s = jnp.asarray(a2, f32).reshape(1, 1)

  # --- VMEM budget + cost estimate --------------------------------------------
  wbytes = (M_pad * C + 9 * M_pad * M_pad + C * M_pad) * cs
  est = (4 * Nb * C * HWp * 4                      # x + out blocks, 2 buffers each
         + 2 * wbytes + 2 * (2 * M_pad + C) * 4    # weights + biases, 2 buffers
         + M_pad * (HWp + 2 * PADH) * cs           # halo-padded y1 scratch
         + 9 * M_pad * CHUNK * cs                  # im2col patch scratch
         + (3 * M_pad + 2 * C) * HWp * 4)          # live f32 intermediates
  vmem_limit = int(min(max(3 * est + (8 << 20), 16 << 20), 64 << 20))

  flops = 2 * N * HWp * M_pad * (2 * C + 9 * M_pad)
  cost = pl.CostEstimate(flops=flops, transcendentals=0,
                         bytes_accessed=2 * N * C * HWp * 4 + wbytes)

  def const_spec(shape):  # full array, VMEM-resident across grid steps
    return pl.BlockSpec(shape, lambda n, _nd=len(shape): (0,) * _nd)

  smem = pltpu.MemorySpace.SMEM
  kernel = functools.partial(_resblock_kernel, H, W, HW, HWp, C, M_pad, PADH,
                             CHUNK, Nb, float(res_scale))

  out = pl.pallas_call(
      kernel,
      out_shape=jax.ShapeDtypeStruct((N, C, HWp), f32),
      grid=(N // Nb,),
      in_specs=[
          pl.BlockSpec((Nb, C, HWp), lambda n: (n, 0, 0)),            # x block
          const_spec((M_pad, C)), const_spec((M_pad, 1)),             # w1, b1
          pl.BlockSpec((1, 1), lambda n: (0, 0), memory_space=smem),  # PReLU a1
          const_spec((M_pad, 9 * M_pad)), const_spec((M_pad, 1)),     # w2, b2
          pl.BlockSpec((1, 1), lambda n: (0, 0), memory_space=smem),  # PReLU a2
          const_spec((C, M_pad)), const_spec((C, 1)),                 # w3, b3
      ],
      out_specs=pl.BlockSpec((Nb, C, HWp), lambda n: (n, 0, 0)),
      scratch_shapes=[
          pltpu.VMEM((M_pad, HWp + 2 * PADH), cdtype),   # halo-padded y1
          pltpu.VMEM((9 * M_pad, CHUNK), cdtype),        # im2col patch chunk
      ],
      compiler_params=pltpu.CompilerParams(
          dimension_semantics=("parallel",),             # megacore on v7x
          vmem_limit_bytes=vmem_limit),
      cost_estimate=cost,
  )(x, w1_k, b1_k, a1_s, w2_k, b2_k, a2_s, w3_k, b3_k)

  if HWp != HW:
    out = out[:, :, :HW]
  return out.reshape(N, C, H, W)


def resblock_ref(x, params, res_scale=0.1):
  """Pure-JAX reference (lax.conv) mirroring the PyTorch forward, in NCHW."""
  w1, b1, a1, w2, b2, a2, w3, b3 = params
  dn = ('NCHW', 'OIHW', 'NCHW')
  y = lax.conv_general_dilated(x, w1, (1, 1), 'VALID', dimension_numbers=dn)
  y = y + b1[None, :, None, None]
  y = jnp.where(y > 0, y, a1 * y)
  y = lax.conv_general_dilated(y, w2, (1, 1), ((1, 1), (1, 1)), dimension_numbers=dn)
  y = y + b2[None, :, None, None]
  y = jnp.where(y > 0, y, a2 * y)
  y = lax.conv_general_dilated(y, w3, (1, 1), 'VALID', dimension_numbers=dn)
  y = y + b3[None, :, None, None]
  return x + res_scale * y


def make_params(key, n_feats):
  """Deterministic synthetic parameters with the module's shapes."""
  mid = n_feats // 4
  ks = jax.random.split(key, 6)
  s = 0.1
  w1 = s * jax.random.normal(ks[0], (mid, n_feats, 1, 1), jnp.float32)
  b1 = s * jax.random.normal(ks[1], (mid,), jnp.float32)
  w2 = s * jax.random.normal(ks[2], (mid, mid, 3, 3), jnp.float32)
  b2 = s * jax.random.normal(ks[3], (mid,), jnp.float32)
  w3 = s * jax.random.normal(ks[4], (n_feats, mid, 1, 1), jnp.float32)
  b3 = s * jax.random.normal(ks[5], (n_feats,), jnp.float32)
  a1 = jnp.float32(0.25)   # nn.PReLU() default init (single shared slope)
  a2 = jnp.float32(0.25)
  return (w1, b1, a1, w2, b2, a2, w3, b3)


if __name__ == "__main__":
  key = jax.random.PRNGKey(0)
  k_x, k_p = jax.random.split(key)

  N, n_feats, Hs, Ws = 2, 16, 16, 16          # n_feats divisible by 4 (mid=4)
  x = jax.random.normal(k_x, (N, n_feats, Hs, Ws), jnp.float32)   # NCHW input
  params = make_params(k_p, n_feats)

  ref = jax.block_until_ready(resblock_ref(x, params, res_scale=0.1))

  # Exact-math path (f32 MXU operands) — tight tolerance.
  out_f32 = jax.block_until_ready(
      resblock_pallas(x, params, res_scale=0.1, matmul_dtype=jnp.float32))
  assert out_f32.shape == x.shape and out_f32.dtype == jnp.float32
  assert jnp.allclose(out_f32, ref, rtol=1e-4, atol=1e-4), "f32 mismatch vs ref"

  # Default fast path (bf16 MXU operands, f32 accumulation / residual).
  out_bf = jax.block_until_ready(resblock_pallas(x, params, res_scale=0.1))
  assert out_bf.shape == x.shape and out_bf.dtype == jnp.float32
  assert jnp.allclose(out_bf, ref, rtol=1e-2, atol=1e-2), "bf16 mismatch vs ref"

  print("KERNEL_OK")
</pallas_src>

<mosaic_0001>
module attributes {stable_mosaic.version = 11 : i64} {
  func.func @_resblock_kernel(%arg0: i32, %arg1: memref<2x16x256xf32, #tpu.memory_space<vmem>>, %arg2: memref<8x16xf32, #tpu.memory_space<vmem>>, %arg3: memref<8x1xf32, #tpu.memory_space<vmem>>, %arg4: memref<1x1xf32, #tpu.memory_space<smem>>, %arg5: memref<8x72xf32, #tpu.memory_space<vmem>>, %arg6: memref<8x1xf32, #tpu.memory_space<vmem>>, %arg7: memref<1x1xf32, #tpu.memory_space<smem>>, %arg8: memref<16x8xf32, #tpu.memory_space<vmem>>, %arg9: memref<16x1xf32, #tpu.memory_space<vmem>>, %arg10: memref<2x16x256xf32, #tpu.memory_space<vmem>>, %arg11: memref<8x512xf32, #tpu.memory_space<vmem>>, %arg12: memref<72x256xf32, #tpu.memory_space<vmem>>) attributes {dimension_semantics = [#tpu.dimension_semantics<parallel>], iteration_bounds = array<i64: 1>, scalar_prefetch = 0 : i64, scratch_operands = 2 : i64, tpu.core_type = #tpu.core_type<tc>, window_params = [{transform_indices = @transform_0, window_bounds = array<i64: 2, 16, 256>}, {pipeline_mode = #tpu.pipeline_mode<synchronous>, transform_indices = @transform_1, window_bounds = array<i64: 8, 16>}, {pipeline_mode = #tpu.pipeline_mode<synchronous>, transform_indices = @transform_2, window_bounds = array<i64: 8, 1>}, {transform_indices = @transform_3, window_bounds = array<i64: 1, 1>}, {pipeline_mode = #tpu.pipeline_mode<synchronous>, transform_indices = @transform_4, window_bounds = array<i64: 8, 72>}, {pipeline_mode = #tpu.pipeline_mode<synchronous>, transform_indices = @transform_5, window_bounds = array<i64: 8, 1>}, {transform_indices = @transform_6, window_bounds = array<i64: 1, 1>}, {pipeline_mode = #tpu.pipeline_mode<synchronous>, transform_indices = @transform_7, window_bounds = array<i64: 16, 8>}, {pipeline_mode = #tpu.pipeline_mode<synchronous>, transform_indices = @transform_8, window_bounds = array<i64: 16, 1>}, {transform_indices = @transform_9, window_bounds = array<i64: 2, 16, 256>}]} {
    %cst = arith.constant 0.000000e+00 : f32
    %0 = vector.broadcast %cst : f32 to vector<8x128xf32>
    %c0 = arith.constant 0 : index
    %c0_0 = arith.constant 0 : index
    %1 = vector.load %arg11[%c0, %c0_0] : memref<8x512xf32, #tpu.memory_space<vmem>>, vector<8x128xf32>
    tpu.vector_store %arg11[%c0, %c0_0], %0 {strides = array<i32>} : memref<8x512xf32, #tpu.memory_space<vmem>>, vector<8x128xf32>,
    %c0_1 = arith.constant 0 : index
    %c384 = arith.constant 384 : index
    %2 = vector.load %arg11[%c0_1, %c384] : memref<8x512xf32, #tpu.memory_space<vmem>>, vector<8x128xf32>
    tpu.vector_store %arg11[%c0_1, %c384], %0 {strides = array<i32>} : memref<8x512xf32, #tpu.memory_space<vmem>>, vector<8x128xf32>,
    %c0_2 = arith.constant 0 : index
    %c0_3 = arith.constant 0 : index
    %3 = memref.load %arg4[%c0_2, %c0_3] : memref<1x1xf32, #tpu.memory_space<smem>>
    %c0_4 = arith.constant 0 : index
    %c0_5 = arith.constant 0 : index
    %4 = memref.load %arg7[%c0_4, %c0_5] : memref<1x1xf32, #tpu.memory_space<smem>>
    %c0_i32 = arith.constant 0 : i32
    %c2_i32 = arith.constant 2 : i32
    %5 = arith.addi %c0_i32, %c2_i32 : i32
    %c1_i32 = arith.constant 1 : i32
    scf.for %arg13 = %c0_i32 to %5 step %c1_i32  : i32 {
      %c1_i32_7 = arith.constant 1 : i32
      %6 = arith.muli %arg13, %c1_i32_7 : i32
      %c0_i32_8 = arith.constant 0 : i32
      %7 = arith.addi %c0_i32_8, %6 : i32
      %8 = arith.index_cast %7 : i32 to index
      %c0_9 = arith.constant 0 : index
      %c0_10 = arith.constant 0 : index
      %9 = vector.load %arg1[%8, %c0_9, %c0_10] : memref<2x16x256xf32, #tpu.memory_space<vmem>>, vector<1x16x256xf32>
      %10 = vector.shape_cast %9 : vector<1x16x256xf32> to vector<16x256xf32>
      %c0_11 = arith.constant 0 : index
      %c0_12 = arith.constant 0 : index
      %11 = vector.load %arg2[%c0_11, %c0_12] : memref<8x16xf32, #tpu.memory_space<vmem>>, vector<8x16xf32>
      %cst_13 = arith.constant dense<0.000000e+00> : vector<8x256xf32>
      %12 = tpu.matmul %11, %10, %cst_13 {dimension_numbers = #tpu.dot_dimension_numbers<[1], [0], [0], [1], [0, 0, 1, 1], [], []>} : vector<8x16xf32>, vector<16x256xf32>, vector<8x256xf32> -> vector<8x256xf32>
      %c0_14 = arith.constant 0 : index
      %c0_15 = arith.constant 0 : index
      %13 = vector.load %arg3[%c0_14, %c0_15] : memref<8x1xf32, #tpu.memory_space<vmem>>, vector<8x1xf32>
      %14 = vector.broadcast %13 : vector<8x1xf32> to vector<8x256xf32>
      %15 = arith.addf %12, %14 : vector<8x256xf32>
      %cst_16 = arith.constant 0.000000e+00 : f32
      %16 = vector.broadcast %cst_16 : f32 to vector<8x256xf32>
      %17 = arith.cmpf ogt, %15, %16 : vector<8x256xf32>
      %18 = vector.broadcast %3 : f32 to vector<8x256xf32>
      %19 = arith.mulf %18, %15 : vector<8x256xf32>
      %20 = arith.select %17, %15, %19 : vector<8x256xi1>, vector<8x256xf32>
      %c0_17 = arith.constant 0 : index
      %c128 = arith.constant 128 : index
      %21 = vector.load %arg11[%c0_17, %c128] : memref<8x512xf32, #tpu.memory_space<vmem>>, vector<8x256xf32>
      tpu.vector_store %arg11[%c0_17, %c128], %20 {strides = array<i32>} : memref<8x512xf32, #tpu.memory_space<vmem>>, vector<8x256xf32>,
      %22 = tpu.iota {dimensions = array<i32: 1>} : vector<1x256xi32>
      %c0_i32_18 = arith.constant 0 : i32
      %23 = vector.broadcast %c0_i32_18 : i32 to vector<1x256xi32>
      %24 = arith.addi %23, %22 : vector<1x256xi32>
      %c16_i32 = arith.constant 16 : i32
      %c0_i32_19 = arith.constant 0 : i32
      %25 = arith.cmpi eq, %c16_i32, %c0_i32_19 : i32
      %c1_i32_20 = arith.constant 1 : i32
      %26 = arith.select %25, %c1_i32_20, %c16_i32 : i32
      %27 = vector.broadcast %26 : i32 to vector<1x256xi32>
      %28 = arith.remsi %24, %27 : vector<1x256xi32>
      %c0_i32_21 = arith.constant 0 : i32
      %29 = vector.broadcast %c0_i32_21 : i32 to vector<1x256xi32>
      %30 = arith.cmpi ne, %28, %29 : vector<1x256xi32>
      %c0_i32_22 = arith.constant 0 : i32
      %31 = vector.broadcast %c0_i32_22 : i32 to vector<1x256xi32>
      %32 = arith.cmpi slt, %28, %31 : vector<1x256xi32>
      %c0_i32_23 = arith.constant 0 : i32
      %33 = arith.cmpi slt, %26, %c0_i32_23 : i32
      %34 = vector.broadcast %33 : i1 to vector<1x256xi1>
      %35 = vector.broadcast %34 : vector<1x256xi1> to vector<1x256xi1>
      %36 = arith.xori %32, %35 : vector<1x256xi1>
      %37 = arith.andi %36, %30 : vector<1x256xi1>
      %38 = vector.broadcast %26 : i32 to vector<1x256xi32>
      %39 = arith.addi %28, %38 : vector<1x256xi32>
      %40 = arith.select %37, %39, %28 : vector<1x256xi1>, vector<1x256xi32>
      %c1_i32_24 = arith.constant 1 : i32
      %41 = vector.broadcast %c1_i32_24 : i32 to vector<1x256xi32>
      %42 = arith.cmpi sge, %40, %41 : vector<1x256xi32>
      %c14_i32 = arith.constant 14 : i32
      %43 = vector.broadcast %c14_i32 : i32 to vector<1x256xi32>
      %44 = arith.cmpi sle, %40, %43 : vector<1x256xi32>
      %c0_25 = arith.constant 0 : index
      %c111 = arith.constant 111 : index
      %45 = vector.load %arg11[%c0_25, %c111] : memref<8x512xf32, #tpu.memory_space<vmem>>, vector<8x256xf32>
      %cst_26 = arith.constant 0.000000e+00 : f32
      %46 = vector.broadcast %cst_26 : f32 to vector<8x256xf32>
      %47 = vector.shape_cast %42 : vector<1x256xi1> to vector<1x256xi1>
      %48 = vector.broadcast %47 : vector<1x256xi1> to vector<8x256xi1>
      %49 = arith.select %48, %45, %46 : vector<8x256xi1>, vector<8x256xf32>
      %c0_27 = arith.constant 0 : index
      %c0_28 = arith.constant 0 : index
      %50 = vector.load %arg12[%c0_27, %c0_28] : memref<72x256xf32, #tpu.memory_space<vmem>>, vector<8x256xf32>
      tpu.vector_store %arg12[%c0_27, %c0_28], %49 {strides = array<i32>} : memref<72x256xf32, #tpu.memory_space<vmem>>, vector<8x256xf32>,
      %c0_29 = arith.constant 0 : index
      %c112 = arith.constant 112 : index
      %51 = vector.load %arg11[%c0_29, %c112] : memref<8x512xf32, #tpu.memory_space<vmem>>, vector<8x256xf32>
      %c8 = arith.constant 8 : index
      %c0_30 = arith.constant 0 : index
      %52 = vector.load %arg12[%c8, %c0_30] : memref<72x256xf32, #tpu.memory_space<vmem>>, vector<8x256xf32>
      tpu.vector_store %arg12[%c8, %c0_30], %51 {strides = array<i32>} : memref<72x256xf32, #tpu.memory_space<vmem>>, vector<8x256xf32>,
      %c0_31 = arith.constant 0 : index
      %c113 = arith.constant 113 : index
      %53 = vector.load %arg11[%c0_31, %c113] : memref<8x512xf32, #tpu.memory_space<vmem>>, vector<8x256xf32>
      %cst_32 = arith.constant 0.000000e+00 : f32
      %54 = vector.broadcast %cst_32 : f32 to vector<8x256xf32>
      %55 = vector.shape_cast %44 : vector<1x256xi1> to vector<1x256xi1>
      %56 = vector.broadcast %55 : vector<1x256xi1> to vector<8x256xi1>
      %57 = arith.select %56, %53, %54 : vector<8x256xi1>, vector<8x256xf32>
      %c16 = arith.constant 16 : index
      %c0_33 = arith.constant 0 : index
      %58 = vector.load %arg12[%c16, %c0_33] : memref<72x256xf32, #tpu.memory_space<vmem>>, vector<8x256xf32>
      tpu.vector_store %arg12[%c16, %c0_33], %57 {strides = array<i32>} : memref<72x256xf32, #tpu.memory_space<vmem>>, vector<8x256xf32>,
      %c0_34 = arith.constant 0 : index
      %c127 = arith.constant 127 : index
      %59 = vector.load %arg11[%c0_34, %c127] : memref<8x512xf32, #tpu.memory_space<vmem>>, vector<8x256xf32>
      %cst_35 = arith.constant 0.000000e+00 : f32
      %60 = vector.broadcast %cst_35 : f32 to vector<8x256xf32>
      %61 = vector.shape_cast %42 : vector<1x256xi1> to vector<1x256xi1>
      %62 = vector.broadcast %61 : vector<1x256xi1> to vector<8x256xi1>
      %63 = arith.select %62, %59, %60 : vector<8x256xi1>, vector<8x256xf32>
      %c24 = arith.constant 24 : index
      %c0_36 = arith.constant 0 : index
      %64 = vector.load %arg12[%c24, %c0_36] : memref<72x256xf32, #tpu.memory_space<vmem>>, vector<8x256xf32>
      tpu.vector_store %arg12[%c24, %c0_36], %63 {strides = array<i32>} : memref<72x256xf32, #tpu.memory_space<vmem>>, vector<8x256xf32>,
      %c0_37 = arith.constant 0 : index
      %c128_38 = arith.constant 128 : index
      %65 = vector.load %arg11[%c0_37, %c128_38] : memref<8x512xf32, #tpu.memory_space<vmem>>, vector<8x256xf32>
      %c32 = arith.constant 32 : index
      %c0_39 = arith.constant 0 : index
      %66 = vector.load %arg12[%c32, %c0_39] : memref<72x256xf32, #tpu.memory_space<vmem>>, vector<8x256xf32>
      tpu.vector_store %arg12[%c32, %c0_39], %65 {strides = array<i32>} : memref<72x256xf32, #tpu.memory_space<vmem>>, vector<8x256xf32>,
      %c0_40 = arith.constant 0 : index
      %c129 = arith.constant 129 : index
      %67 = vector.load %arg11[%c0_40, %c129] : memref<8x512xf32, #tpu.memory_space<vmem>>, vector<8x256xf32>
      %cst_41 = arith.constant 0.000000e+00 : f32
      %68 = vector.broadcast %cst_41 : f32 to vector<8x256xf32>
      %69 = vector.shape_cast %44 : vector<1x256xi1> to vector<1x256xi1>
      %70 = vector.broadcast %69 : vector<1x256xi1> to vector<8x256xi1>
      %71 = arith.select %70, %67, %68 : vector<8x256xi1>, vector<8x256xf32>
      %c40 = arith.constant 40 : index
      %c0_42 = arith.constant 0 : index
      %72 = vector.load %arg12[%c40, %c0_42] : memref<72x256xf32, #tpu.memory_space<vmem>>, vector<8x256xf32>
      tpu.vector_store %arg12[%c40, %c0_42], %71 {strides = array<i32>} : memref<72x256xf32, #tpu.memory_space<vmem>>, vector<8x256xf32>,
      %c0_43 = arith.constant 0 : index
      %c143 = arith.constant 143 : index
      %73 = vector.load %arg11[%c0_43, %c143] : memref<8x512xf32, #tpu.memory_space<vmem>>, vector<8x256xf32>
      %cst_44 = arith.constant 0.000000e+00 : f32
      %74 = vector.broadcast %cst_44 : f32 to vector<8x256xf32>
      %75 = vector.shape_cast %42 : vector<1x256xi1> to vector<1x256xi1>
      %76 = vector.broadcast %75 : vector<1x256xi1> to vector<8x256xi1>
      %77 = arith.select %76, %73, %74 : vector<8x256xi1>, vector<8x256xf32>
      %c48 = arith.constant 48 : index
      %c0_45 = arith.constant 0 : index
      %78 = vector.load %arg12[%c48, %c0_45] : memref<72x256xf32, #tpu.memory_space<vmem>>, vector<8x256xf32>
      tpu.vector_store %arg12[%c48, %c0_45], %77 {strides = array<i32>} : memref<72x256xf32, #tpu.memory_space<vmem>>, vector<8x256xf32>,
      %c0_46 = arith.constant 0 : index
      %c144 = arith.constant 144 : index
      %79 = vector.load %arg11[%c0_46, %c144] : memref<8x512xf32, #tpu.memory_space<vmem>>, vector<8x256xf32>
      %c56 = arith.constant 56 : index
      %c0_47 = arith.constant 0 : index
      %80 = vector.load %arg12[%c56, %c0_47] : memref<72x256xf32, #tpu.memory_space<vmem>>, vector<8x256xf32>
      tpu.vector_store %arg12[%c56, %c0_47], %79 {strides = array<i32>} : memref<72x256xf32, #tpu.memory_space<vmem>>, vector<8x256xf32>,
      %c0_48 = arith.constant 0 : index
      %c145 = arith.constant 145 : index
      %81 = vector.load %arg11[%c0_48, %c145] : memref<8x512xf32, #tpu.memory_space<vmem>>, vector<8x256xf32>
      %cst_49 = arith.constant 0.000000e+00 : f32
      %82 = vector.broadcast %cst_49 : f32 to vector<8x256xf32>
      %83 = vector.shape_cast %44 : vector<1x256xi1> to vector<1x256xi1>
      %84 = vector.broadcast %83 : vector<1x256xi1> to vector<8x256xi1>
      %85 = arith.select %84, %81, %82 : vector<8x256xi1>, vector<8x256xf32>
      %c64 = arith.constant 64 : index
      %c0_50 = arith.constant 0 : index
      %86 = vector.load %arg12[%c64, %c0_50] : memref<72x256xf32, #tpu.memory_space<vmem>>, vector<8x256xf32>
      tpu.vector_store %arg12[%c64, %c0_50], %85 {strides = array<i32>} : memref<72x256xf32, #tpu.memory_space<vmem>>, vector<8x256xf32>,
      %c0_51 = arith.constant 0 : index
      %c0_52 = arith.constant 0 : index
      %87 = vector.load %arg5[%c0_51, %c0_52] : memref<8x72xf32, #tpu.memory_space<vmem>>, vector<8x72xf32>
      %c0_53 = arith.constant 0 : index
      %c0_54 = arith.constant 0 : index
      %88 = vector.load %arg12[%c0_53, %c0_54] : memref<72x256xf32, #tpu.memory_space<vmem>>, vector<72x256xf32>
      %cst_55 = arith.constant dense<0.000000e+00> : vector<8x256xf32>
      %89 = tpu.matmul %87, %88, %cst_55 {dimension_numbers = #tpu.dot_dimension_numbers<[1], [0], [0], [1], [0, 0, 1, 1], [], []>} : vector<8x72xf32>, vector<72x256xf32>, vector<8x256xf32> -> vector<8x256xf32>
      %c0_56 = arith.constant 0 : index
      %c0_57 = arith.constant 0 : index
      %90 = vector.load %arg6[%c0_56, %c0_57] : memref<8x1xf32, #tpu.memory_space<vmem>>, vector<8x1xf32>
      %91 = vector.broadcast %90 : vector<8x1xf32> to vector<8x256xf32>
      %92 = arith.addf %89, %91 : vector<8x256xf32>
      %cst_58 = arith.constant 0.000000e+00 : f32
      %93 = vector.broadcast %cst_58 : f32 to vector<8x256xf32>
      %94 = arith.cmpf ogt, %92, %93 : vector<8x256xf32>
      %95 = vector.broadcast %4 : f32 to vector<8x256xf32>
      %96 = arith.mulf %95, %92 : vector<8x256xf32>
      %97 = arith.select %94, %92, %96 : vector<8x256xi1>, vector<8x256xf32>
      %c0_59 = arith.constant 0 : index
      %c0_60 = arith.constant 0 : index
      %98 = vector.load %arg8[%c0_59, %c0_60] : memref<16x8xf32, #tpu.memory_space<vmem>>, vector<16x8xf32>
      %cst_61 = arith.constant dense<0.000000e+00> : vector<16x256xf32>
      %99 = tpu.matmul %98, %97, %cst_61 {dimension_numbers = #tpu.dot_dimension_numbers<[1], [0], [0], [1], [0, 0, 1, 1], [], []>} : vector<16x8xf32>, vector<8x256xf32>, vector<16x256xf32> -> vector<16x256xf32>
      %c0_62 = arith.constant 0 : index
      %c0_63 = arith.constant 0 : index
      %100 = vector.load %arg9[%c0_62, %c0_63] : memref<16x1xf32, #tpu.memory_space<vmem>>, vector<16x1xf32>
      %101 = vector.broadcast %100 : vector<16x1xf32> to vector<16x256xf32>
      %102 = arith.addf %99, %101 : vector<16x256xf32>
      %103 = arith.index_cast %7 : i32 to index
      %c0_64 = arith.constant 0 : index
      %c0_65 = arith.constant 0 : index
      %104 = vector.load %arg1[%103, %c0_64, %c0_65] : memref<2x16x256xf32, #tpu.memory_space<vmem>>, vector<1x16x256xf32>
      %105 = vector.shape_cast %104 : vector<1x16x256xf32> to vector<16x256xf32>
      %cst_66 = arith.constant 1.000000e-01 : f32
      %106 = vector.broadcast %cst_66 : f32 to vector<16x256xf32>
      %107 = arith.mulf %106, %102 : vector<16x256xf32>
      %108 = arith.addf %105, %107 : vector<16x256xf32>
      %109 = arith.index_cast %7 : i32 to index
      %c0_67 = arith.constant 0 : index
      %c0_68 = arith.constant 0 : index
      %110 = vector.load %arg10[%109, %c0_67, %c0_68] : memref<2x16x256xf32, #tpu.memory_space<vmem>>, vector<1x16x256xf32>
      %111 = vector.shape_cast %110 : vector<1x16x256xf32> to vector<16x256xf32>
      %112 = vector.shape_cast %108 : vector<16x256xf32> to vector<1x16x256xf32>
      tpu.vector_store %arg10[%109, %c0_67, %c0_68], %112 {strides = array<i32>} : memref<2x16x256xf32, #tpu.memory_space<vmem>>, vector<1x16x256xf32>,
    }
    %c2_i32_6 = arith.constant 2 : i32
    return
  }
  func.func @transform_0(%arg0: i32) -> (i32, i32, i32) {
    %c0_i32 = arith.constant 0 : i32
    %c0_i32_0 = arith.constant 0 : i32
    %c0_i32_1 = arith.constant 0 : i32
    return %arg0, %c0_i32, %c0_i32_0 : i32, i32, i32
  }
  func.func @transform_1(%arg0: i32) -> (i32, i32) {
    %c0_i32 = arith.constant 0 : i32
    %c0_i32_0 = arith.constant 0 : i32
    %c0_i32_1 = arith.constant 0 : i32
    return %c0_i32, %c0_i32_0 : i32, i32
  }
  func.func @transform_2(%arg0: i32) -> (i32, i32) {
    %c0_i32 = arith.constant 0 : i32
    %c0_i32_0 = arith.constant 0 : i32
    %c0_i32_1 = arith.constant 0 : i32
    return %c0_i32, %c0_i32_0 : i32, i32
  }
  func.func @transform_3(%arg0: i32) -> (i32, i32) {
    %c0_i32 = arith.constant 0 : i32
    %c0_i32_0 = arith.constant 0 : i32
    %c0_i32_1 = arith.constant 0 : i32
    return %c0_i32, %c0_i32_0 : i32, i32
  }
  func.func @transform_4(%arg0: i32) -> (i32, i32) {
    %c0_i32 = arith.constant 0 : i32
    %c0_i32_0 = arith.constant 0 : i32
    %c0_i32_1 = arith.constant 0 : i32
    return %c0_i32, %c0_i32_0 : i32, i32
  }
  func.func @transform_5(%arg0: i32) -> (i32, i32) {
    %c0_i32 = arith.constant 0 : i32
    %c0_i32_0 = arith.constant 0 : i32
    %c0_i32_1 = arith.constant 0 : i32
    return %c0_i32, %c0_i32_0 : i32, i32
  }
  func.func @transform_6(%arg0: i32) -> (i32, i32) {
    %c0_i32 = arith.constant 0 : i32
    %c0_i32_0 = arith.constant 0 : i32
    %c0_i32_1 = arith.constant 0 : i32
    return %c0_i32, %c0_i32_0 : i32, i32
  }
  func.func @transform_7(%arg0: i32) -> (i32, i32) {
    %c0_i32 = arith.constant 0 : i32
    %c0_i32_0 = arith.constant 0 : i32
    %c0_i32_1 = arith.constant 0 : i32
    return %c0_i32, %c0_i32_0 : i32, i32
  }
  func.func @transform_8(%arg0: i32) -> (i32, i32) {
    %c0_i32 = arith.constant 0 : i32
    %c0_i32_0 = arith.constant 0 : i32
    %c0_i32_1 = arith.constant 0 : i32
    return %c0_i32, %c0_i32_0 : i32, i32
  }
  func.func @transform_9(%arg0: i32) -> (i32, i32, i32) {
    %c0_i32 = arith.constant 0 : i32
    %c0_i32_0 = arith.constant 0 : i32
    %c0_i32_1 = arith.constant 0 : i32
    return %arg0, %c0_i32, %c0_i32_0 : i32, i32, i32
  }
}

</mosaic_0001>

<bundles_post_ra>
// kernel: tpu_custom_call.1
= control target key start
LH: loop header
LB: loop body
LE: loop exit
PB: predicated region body
PF: predicated region fallthrough
CT: control target
= control target key end

     0   :  { %16 = vsyncpa [#allocation7], 0  ;;  %s1054_s0 = inlined_call_operand.vmem [shape: f32[2,16,256], index: 0, kind: input, shape index: {}]   ;;  %s1055_s1 = inlined_call_operand.hbm [shape: f32[8,16], index: 1, kind: input, shape index: {}]   ;;  %s1056_s2 = inlined_call_operand.vmem [shape: f32[8,1], index: 2, kind: input, shape index: {}]   ;;  %s1057_s3 = inlined_call_operand.<no memory space> [shape: f32[1,1], index: 3, kind: input, shape index: {}]   ;;  %s1058_s4 = inlined_call_operand.hbm [shape: f32[8,72], index: 4, kind: input, shape index: {}]   ;;  %s1059_s5 = inlined_call_operand.vmem [shape: f32[8,1], index: 5, kind: input, shape index: {}]   ;;  %s1060_s6 = inlined_call_operand.<no memory space> [shape: f32[1,1], index: 6, kind: input, shape index: {}]   ;;  %s1061_s7 = inlined_call_operand.vmem [shape: f32[16,8], index: 7, kind: input, shape index: {}]   ;;  %s1062_s8 = inlined_call_operand.vmem [shape: f32[16,1], index: 8, kind: input, shape index: {}]   ;;  %s1063_s9 = inlined_call_operand.hbm [shape: f32[2,16,256], index: 9, kind: output, shape index: {}]  }
   0x1   :  { %17 = vsyncpa [#allocation10], 0 }
   0x2   :  { %18 = vsyncpa [#allocation8], 0  ;;  %s814_s30 = smov [#allocation6]   ;;  %s815_s11 = smov [#allocation9]  }
   0x3   :  { %s27_s10 = sshll.u32 %s814_s30, 4  ;;  %s41_s12 = sshll.u32 %s815_s11, 4  ;;  %s28_s10 = int_to_ptr.vmem [resolvable:$true] %s27_s10  ;;  %s42_s12 = int_to_ptr.vmem [resolvable:$true] %s41_s12 }
   0x4   :  { %s734_s15 = scalar_lea.hbm %s1055_s1, 128 }
   0x5   :  { %p735_p0 = scmp.ne.s32.totalorder %s1055_s1, %s734_s15  ;;  %p738_p1 = scmp.lt.u32.totalorder %s734_s15, %s1055_s1 }
   0x7   :  { %p740_p2 = pnand %p738_p1, %p735_p0 }
   0x9   :  { %743 = shalt.err (!%p740_p2)
}
   0xa   :  { %s744_s20 = scalar_lea.vmem %s28_s10, 128  ;;  %p749_p4 = scmp.lt.s32.totalorder %s28_s10, %s28_s10 }
   0xb   :  { %p745_p3 = scmp.ne.s32.totalorder %s28_s10, %s744_s20  ;;  %p750_p5 = scmp.lt.s32.totalorder %s744_s20, %s744_s20 }
   0xd   :  { %p751_p6 = por %p750_p5, %p749_p4 }
   0xf   :  { %p752_p7 = pnand %p751_p6, %p745_p3 }
  0x11   :  { %755 = shalt.err (!%p752_p7)
}
  0x12   :  { %30 = dma.hbm_to_vmem [thread:$0]  %s1055_s1, 128, %s28_s10, [#allocation7]  }
  0x13   :  { %s756_s25 = scalar_lea.hbm %s1058_s4, 128 }
  0x14   :  { %p757_p8 = scmp.ne.s32.totalorder %s1058_s4, %s756_s25  ;;  %p760_p9 = scmp.lt.u32.totalorder %s756_s25, %s1058_s4 }
  0x16   :  { %p762_p10 = pnand %p760_p9, %p757_p8 }
  0x18   :  { %765 = shalt.err (!%p762_p10)
}
  0x19   :  { %s766_s30 = scalar_lea.vmem %s42_s12, 128  ;;  %p771_p12 = scmp.lt.s32.totalorder %s42_s12, %s42_s12 }
  0x1a   :  { %p767_p11 = scmp.ne.s32.totalorder %s42_s12, %s766_s30  ;;  %p772_p13 = scmp.lt.s32.totalorder %s766_s30, %s766_s30 }
  0x1c   :  { %p773_p0 = por %p772_p13, %p771_p12 }
  0x1e   :  { %p774_p1 = pnand %p773_p0, %p767_p11 }
  0x20   :  { %777 = shalt.err (!%p774_p1)
}
  0x21   :  { %44 = dma.hbm_to_vmem [thread:$0]  %s1058_s4, 128, %s42_s12, [#allocation10]  }
  0x22   :  { %804 = dma.done.wait [#allocation7], 128  }
  0x23   :  { %805 = vsyncadd [#allocation7], 4294967168 }
  0x24   :  { %806 = dma.done.wait [#allocation10], 128  }
  0x25   :  { %807 = vsyncadd [#allocation10], 4294967168  ;;  %v816_v0 = vmov 0.0   ;;  %s905_s11 = smov 0  }
  0x26   :  { %59 = vst [vmem:[#allocation2] sm:$0xff] %v816_v0  ;;  %60 = vst [vmem:[#allocation2 + $0x18] sm:$0xff] %v816_v0 }
  0x27 LB: > { %v77_v1 = vld [vmem:[%s1056_s2] sm:$0xff]  ;;  %v817_v2 = vmov 0.0   ;;  %v818_v3 = vmov 0   ;;  %s630_s4 = sshll.u32 %s812_s11, 5  ;;  %vm83_vm0 = vcmask 130048   ;;  %s819_s17 = smov 17   ;;  %v160_v14 = vstv %s1057_s3  ;;  %s812_s11 = sphi %s905_s11, %s68_s11  }
  0x28   : > { %151 = vmatprep.mubr.f32.mxu0 %v817_v2  ;;  %697 = vset.pattern.permute.xlu0 %v818_v3  ;;  %s71_s16 = scalar_lea.vmem %s1054_s0, %s630_s4  ;;  %v76_v10 = vld [vmem:[#allocation6] sm:$0xff]  ;;  %s820_s18 = smov 16   ;;  %v483_v26 = vld [vmem:[%s1062_s8 + $0x8] sm:$0xff]  ;;  %v167_v27 = vlaneseq  ;;  %vm214_vm4 = vcmask 138240   ;;  %vm257_vm6 = vcmask 121856   ;;  %vm278_vm7 = vcmask 7168  }
  0x29   : > { %80 = vperm.xlu0 %697, %v77_v1   ;;  %466 = vmatprep.mubr.f32.mxu1 %v817_v2  ;;  %v921_v4 = vld [vmem:[%s71_s16 + $0x8] sm:$0xff]  ;;  %v923_v5 = vld [vmem:[%s71_s16 + $0x18] sm:$0xff]  ;;  %v925_v6 = vld [vmem:[%s71_s16] sm:$0xff]  ;;  %s821_s19 = smov 15   ;;  %s822_s20 = smov 1   ;;  %vm827_vm8 = vmmov 1   ;;  %v475_v38 = vstv %s1060_s6 }
  0x2a   : > { %733 = vset.pattern.permute.xlu1 %v818_v3  ;;  %v644_v7 = vpack.c.bf16 %v923_v5, %v921_v4  ;;  %v929_v8 = vld [vmem:[%s71_s16 + $0x10] sm:$0xff]  ;;  %s823_s23 = smov 113   ;;  %s824_s24 = smov 127   ;;  %v392_v25 = vld [vmem:[%s1059_s5] sm:$0xff]  ;;  %v168_v30 = vand.u32 127, %v167_v27  ;;  %vm303_vm15 = vcmask 1039360  }
  0x2b   : > { %v646_v9 = vpack.c.bf16 %v929_v8, %v925_v6  ;;  %s825_s25 = smov 112   ;;  %s826_s26 = smov 111  }
  0x2c   : > { %645 = vmatprep.subr.bf16.mxu0 %v644_v7  ;;  %v169_v31 = vadd.s32 128, %v168_v30  ;;  %v174_v35 = vand.u32 15, %v168_v30  ;;  %s68_s11 = sadd.s32 1, %s812_s11  }
  0x2d   : > { %647 = vmatpush1.bf16.msra.mxu0 %v646_v9  ;;  %v198_v11 = vld [vmem:[#allocation2] sm:$0xff]  ;;  %v293_v23 = vld [vmem:[#allocation2 + $0x18] sm:$0xff]  ;;  %p65_p2 = scmp.ge.s32.totalorder %s68_s11, 2  }
  0x2e   : > { %208 = vrot.lane.b32.xlu1 %v198_v11, %s819_s17  ;;  %229 = vrot.lane.b32.xlu0 %v198_v11, %s820_s18  ;;  %v181_v34 = vand.u32 15, %v169_v31  ;;  %vm960_vm5 = vcmp.ge.s32.totalorder %v174_v35, 1  ;;  %vm984_vm12 = vcmp.le.s32.totalorder %v174_v35, 14  ;;  %v482_v35 = vld [vmem:[%s1062_s8] sm:$0xff] }
  0x2f   : > { %vm980_vm11 = vmpackc.low %vm827_vm8, %vm960_vm5 }
  0x30   : > { %625 = vmatmul.mubr.msk.f32.vlgmr.msra.gmra.mrb[0].mxu0 %vm83_vm0, %v76_v10  ;;  %vm956_vm3 = vcmp.ge.s32.totalorder %v181_v34, 1  ;;  %vm973_vm10 = vcmp.le.s32.totalorder %v181_v34, 14  ;;  %vm658_vm14 = vmpackc.low %vm960_vm5, %vm984_vm12  ;;  %v373_v34 = vld [vmem:[#allocation9] sm:$0xff]  ;;  %vm398_vm5 = vcmask 588800  }
  0x31   : > { %565 = vmatprep.mubr.f32.mxu0 %v817_v2  ;;  %vm968_vm9 = vmpackc.low %vm827_vm8, %vm956_vm3 }
  0x32   : > { %251 = vrot.lane.b32.xlu1 %v198_v11, %s821_s19  ;;  %272 = vrot.lane.b32.xlu0 %v198_v11, %s822_s20  ;;  %vm655_vm13 = vmpackc.low %vm956_vm3, %vm973_vm10 }
  0x33   : > { %vm664_vm3 = vmpackc.low %vm984_vm12, %vm827_vm8 }
  0xa0   : > { %v209_v28 = vpop.permute.xlu1 %208 }
  0xa4   : > { %v252_v32 = vpop.permute.xlu1 %251 }
  0xa8   : > { %v81_v12 = vpop.permute.xlu0 %80 }
  0xac   : > { %v230_v29 = vpop.permute.xlu0 %229 }
  0xb0   : > { %v273_v33 = vpop.permute.xlu0 %272 }
 0x103   : > { %v153_v13 = vpop.f32.mrb[0].mxu0 }
 0x104   : > { %v154_v15 = vadd.f32 %v153_v13, %v81_v12  ;;  %v155_v16 = vpop.f32.mrb[1].mxu0 }
 0x105   : > { %v156_v17 = vadd.f32 %v155_v16, %v81_v12 }
 0x106   : > { %vm158_vm1 = vcmp.gt.f32.partialorder %v154_v15, 0.0  ;;  %v161_v18 = vmul.f32 %v160_v14, %v154_v15 }
 0x107   : > { %vm159_vm2 = vcmp.gt.f32.partialorder %v156_v17, 0.0  ;;  %v162_v19 = vmul.f32 %v160_v14, %v156_v17 }
 0x108   : > { %v938_v20 = vsel %vm158_vm1, %v154_v15, %v161_v18  ;;  %vm324_vm1 = vcmask 924672  }
 0x109   : > { %v940_v21 = vsel %vm159_vm2, %v156_v17, %v162_v19  ;;  %vm345_vm2 = vcmask 916480  }
 0x10a   : > { %v703_v22 = vpack.i.bf16 %v940_v21, %v938_v20  ;;  %v718_v24 = vpack.i.bf16 %v293_v23, %v940_v21 }
 0x10c   : > { %704 = vrot.lane.b32.xlu1 %v703_v22, %s820_s18  ;;  %699 = vrot.lane.b32.xlu0 %v703_v22, %s819_s17  ;;  %s591_s18 = scalar_lea.vmem [#allocation11], %s630_s4 }
 0x110   : > { %709 = vrot.lane.b32.xlu1 %v703_v22, %s821_s19  ;;  %714 = vrot.lane.b32.xlu0 %v703_v22, %s822_s20  ;;  %s828_s19 = smov (%p65_p2), [#allocation11]  }
 0x111   :  { %s601_s20 = sshll.u32 (%p65_p2), %s828_s19, 4  ;;  %s602_s20 = int_to_ptr.vmem [resolvable:$true] %s601_s20 }
 0x112   :  { %s778_s4 = scalar_lea.vmem (%p65_p2), %s602_s20, 1024  ;;  %p783_p4 = scmp.lt.s32.totalorder (%p65_p2), %s602_s20, %s602_s20 }
 0x113   :  { %p779_p3 = scmp.ne.s32.totalorder (%p65_p2), %s602_s20, %s778_s4  ;;  %p784_p5 = scmp.lt.s32.totalorder (%p65_p2), %s778_s4, %s778_s4 }
 0x114   : > { %318 = vrot.lane.b32.xlu1 %v938_v20, %s823_s23  ;;  %297 = vrot.lane.b32.xlu0 %v938_v20, %s824_s24 }
 0x115   :  { %p785_p6 = por (%p65_p2), %p784_p5, %p783_p4 }
 0x117   :  { %p786_p7 = pnand (%p65_p2), %p785_p6, %p779_p3 }
 0x118   : > { %719 = vrot.lane.b32.xlu1 %v718_v24, %s824_s24  ;;  %729 = vrot.lane.b32.xlu0 %v718_v24, %s825_s25 }
 0x11c   : > { %724 = vrot.lane.b32.xlu1 %v718_v24, %s823_s23  ;;  %339 = vrot.lane.b32.xlu0 %v938_v20, %s825_s25 }
 0x120   : > { %360 = vrot.lane.b32.xlu1 %v940_v21, %s826_s26  ;;  %362 = vrot.lane.b32.xlu0 %v293_v23, %s826_s26 }
 0x124   : > { %358 = vrot.lane.b32.xlu1 %v938_v20, %s826_s26  ;;  %395 = vperm.xlu0 %697, %v392_v25  }
 0x128   : > { %491 = vperm.xlu0 %697, %v483_v26   ;;  %486 = vperm.xlu1 %733, %v482_v35  }
 0x17e   : > { %v705_v36 = vpop.permute.xlu1 %704  ;;  %v700_v37 = vpop.permute.xlu0 %699 }
 0x17f   : > { %v707_v40 = vunpack.i.h.bf16 %v705_v36  ;;  %v706_v41 = vunpack.i.l.bf16 %v705_v36  ;;  %v702_v42 = vunpack.i.h.bf16 %v700_v37  ;;  %v701_v43 = vunpack.i.l.bf16 %v700_v37 }
 0x181   : > { %v216_v44 = vsel %vm214_vm4, %v701_v43, %v702_v42  ;;  %v236_v45 = vsel %vm83_vm0, %v706_v41, %v707_v40  ;;  %v215_v47 = vsel %vm214_vm4, %v209_v28, %v701_v43  ;;  %v235_v48 = vsel %vm83_vm0, %v230_v29, %v706_v41  ;;  %vm661_vm0 = vmpackc.low %vm973_vm10, %vm827_vm8 }
 0x182   : > { %v710_v49 = vpop.permute.xlu1 %709  ;;  %v715_v50 = vpop.permute.xlu0 %714  ;;  %v648_v52 = vpack.c.bf16 %v236_v45, %v216_v44  ;;  %v651_v53 = vpack.c.bf16 %v235_v48, %v215_v47  ;;  %vm364_vm4 = vcmask 908288   ;;  %v480_v45 = vld [vmem:[%s1061_s7] sm:$0xff]  ;;  %vm494_vm8 = vcmask 64512   ;;  %v481_v47 = vld [vmem:[%s1061_s7 + $0x8] sm:$0xff] }
 0x183   : > { %v712_v56 = vunpack.i.h.bf16 %v710_v49  ;;  %v711_v57 = vunpack.i.l.bf16 %v710_v49  ;;  %v717_v58 = vunpack.i.h.bf16 %v715_v50  ;;  %v716_v59 = vunpack.i.l.bf16 %v715_v50 }
 0x184   : > { %650 = vmatprep.subr.msk.bf16.mxu1 %vm968_vm9, %v648_v52 }
 0x185   : > { %v258_v60 = vsel %vm257_vm6, %v252_v32, %v711_v57  ;;  %v259_v61 = vsel %vm257_vm6, %v711_v57, %v712_v56  ;;  %v279_v62 = vsel %vm278_vm7, %v273_v33, %v716_v59  ;;  %v280_v63 = vsel %vm278_vm7, %v716_v59, %v717_v58  ;;  %653 = vmatpush1.bf16.msk.msra.mxu1 %vm980_vm11, %v651_v53 }
 0x186   : > { %v654_v0 = vpack.c.bf16 %v280_v63, %v259_v61  ;;  %v657_v1 = vpack.c.bf16 %v279_v62, %v258_v60  ;;  %v319_v3 = vpop.permute.xlu1 %318  ;;  %v298_v7 = vpop.permute.xlu0 %297 }
 0x188   : > { %656 = vmatprep.subr.msk.bf16.mxu1 %vm655_vm13, %v654_v0 }
 0x189   : > { %659 = vmatpush1.bf16.msk.msra.mxu1 %vm658_vm14, %v657_v1 }
 0x18a   : > { %v720_v9 = vpop.permute.xlu1 %719  ;;  %v730_v10 = vpop.permute.xlu0 %729 }
 0x18b   : > { %v722_v11 = vunpack.i.h.bf16 %v720_v9  ;;  %v721_v12 = vunpack.i.l.bf16 %v720_v9  ;;  %v732_v15 = vunpack.i.h.bf16 %v730_v10  ;;  %v731_v16 = vunpack.i.l.bf16 %v730_v10 }
 0x18d   : > { %v304_v13 = vsel %vm303_vm15, %v298_v7, %v721_v12  ;;  %v305_v14 = vsel %vm303_vm15, %v721_v12, %v722_v11  ;;  %v347_v28 = vsel %vm345_vm2, %v731_v16, %v732_v15 }
 0x18e   : > { %v660_v17 = vpack.c.bf16 %v305_v14, %v940_v21  ;;  %v663_v18 = vpack.c.bf16 %v304_v13, %v938_v20  ;;  %v725_v19 = vpop.permute.xlu1 %724  ;;  %v340_v22 = vpop.permute.xlu0 %339 }
 0x18f   : > { %v727_v23 = vunpack.i.h.bf16 %v725_v19  ;;  %v726_v24 = vunpack.i.l.bf16 %v725_v19  ;;  %v346_v27 = vsel %vm345_vm2, %v340_v22, %v731_v16 }
 0x190   : > { %662 = vmatprep.subr.msk.bf16.mxu1 %vm661_vm0, %v660_v17 }
 0x191   : > { %v325_v25 = vsel %vm324_vm1, %v319_v3, %v726_v24  ;;  %v326_v26 = vsel %vm324_vm1, %v726_v24, %v727_v23  ;;  %665 = vmatpush1.bf16.msk.msra.mxu1 %vm664_vm3, %v663_v18 }
 0x192   : > { %v666_v29 = vpack.c.bf16 %v347_v28, %v326_v26  ;;  %v669_v21 = vpack.c.bf16 %v346_v27, %v325_v25  ;;  %v361_v30 = vpop.permute.xlu1 %360  ;;  %v363_v20 = vpop.permute.xlu0 %362 }
 0x193   : > { %v366_v31 = vsel %vm364_vm4, %v361_v30, %v363_v20 }
 0x194   : > { %668 = vmatprep.subr.msk.bf16.mxu1 %vm968_vm9, %v666_v29 }
 0x195   : > { %671 = vmatpush1.bf16.msk.msra.mxu1 %vm980_vm11, %v669_v21 }
 0x196   : > { %v359_v32 = vpop.permute.xlu1 %358  ;;  %642 = vmatprep.subr.msk.mxu1 %vm973_vm10, %v366_v31 }
 0x197   : > { %v365_v33 = vsel %vm364_vm4, %v359_v32, %v361_v30 }
 0x199   : > { %643 = vmatpush1.msk.msra.mxu1 %vm984_vm12, %v365_v33 }
 0x19a   : > { %626 = vmatmul.mubr.msk.f32.vlgmr.msra.gmra.mrb[0].mxu1 %vm398_vm5, %v373_v34 }
 0x1a3   : > { %v396_v36 = vpop.permute.xlu0 %395 }
 0x1a7   : > { %v487_v48 = vpop.permute.xlu1 %486  ;;  %v492_v54 = vpop.permute.xlu0 %491 }
 0x26d   : > { %v468_v37 = vpop.f32.mrb[0].mxu1 }
 0x26e   : > { %v469_v39 = vadd.f32 %v468_v37, %v396_v36  ;;  %v470_v40 = vpop.f32.mrb[1].mxu1 }
 0x26f   : > { %v471_v41 = vadd.f32 %v470_v40, %v396_v36 }
 0x270   : > { %v476_v42 = vmul.f32 %v475_v38, %v469_v39  ;;  %vm473_vm6 = vcmp.gt.f32.partialorder %v469_v39, 0.0 }
 0x271   : > { %v477_v43 = vmul.f32 %v475_v38, %v471_v41  ;;  %vm474_vm7 = vcmp.gt.f32.partialorder %v471_v41, 0.0 }
 0x272   : > { %v478_v46 = vsel %vm473_vm6, %v469_v39, %v476_v42 }
 0x273   : > { %v479_v44 = vsel %vm474_vm7, %v471_v41, %v477_v43 }
 0x274   : > { %501 = vmatprep.subr.mxu0 %v479_v44 }
 0x275   : > { %502 = vmatpush1.msra.mxu0 %v478_v46 }
 0x276   : > { %627 = vmatmul.mubr.msk.f32.vlgmr.msra.gmra.mrb[2].mxu0 %vm494_vm8, %v480_v45 }
 0x277   : > { %571 = vmatprep.mubr.f32.mxu0 %v817_v2 }
 0x27a   : > { %628 = vmatmul.mubr.msk.f32.gmra.mrb[4].mxu0 %vm494_vm8, %v481_v47 }
 0x349   : > { %v567_v49 = vpop.f32.mrb[2].mxu0 }
 0x34a   : > { %v568_v50 = vadd.f32 %v567_v49, %v487_v48  ;;  %v569_v51 = vpop.f32.mrb[3].mxu0 }
 0x34b   : > { %v570_v52 = vadd.f32 %v569_v51, %v487_v48 }
 0x34c   : > { %v582_v53 = vmul.f32 0.1, %v568_v50 }
 0x34d   : > { %v583_v55 = vmul.f32 0.1, %v570_v52  ;;  %v573_v56 = vpop.f32.mrb[4].mxu0 }
 0x34e   : > { %v586_v57 = vadd.f32 %v582_v53, %v925_v6  ;;  %v574_v58 = vadd.f32 %v573_v56, %v492_v54  ;;  %v575_v59 = vpop.f32.mrb[5].mxu0 }
 0x34f   : > { %v587_v2 = vadd.f32 %v583_v55, %v921_v4  ;;  %v576_v60 = vadd.f32 %v575_v59, %v492_v54  ;;  %67 = sbr.rel (!%p65_p2) target bundleno = 39 (0x27), region = 73 }
 0x350   : > { %592 = vst [vmem:[%s591_s18] sm:$0xff] %v586_v57  ;;  %v584_v61 = vmul.f32 0.1, %v574_v58 }
 0x351   : > { %593 = vst [vmem:[%s591_s18 + $0x8] sm:$0xff] %v587_v2  ;;  %v585_v62 = vmul.f32 0.1, %v576_v60 }
 0x352   : > { %v588_v63 = vadd.f32 %v584_v61, %v929_v8 }
 0x353   : > { %v589_v0 = vadd.f32 %v585_v62, %v923_v5 }
 0x354   : > { %594 = vst [vmem:[%s591_s18 + $0x10] sm:$0xff] %v588_v63 }
 0x355   : > { %595 = vst [vmem:[%s591_s18 + $0x18] sm:$0xff] %v589_v0 }
 0x356   :  { %789 = shalt.err (!%p786_p7)
}
 0x357   :  { %s790_s23 = scalar_lea.hbm %s1063_s9, 1024 }
 0x358   :  { %p791_p8 = scmp.ne.s32.totalorder %s1063_s9, %s790_s23  ;;  %p794_p9 = scmp.lt.u32.totalorder %s790_s23, %s1063_s9 }
 0x35a   :  { %p796_p10 = pnand %p794_p9, %p791_p8 }
 0x35c   :  { %799 = shalt.err (!%p796_p10)
}
 0x35d   :  { %s829_s0 = smov 256   ;;  %s830_s2 = smov 16  }
 0x35e   :  { %607 = dma.vmem_to_hbm [thread:$0]  %s602_s20, 1024, %s1063_s9, [#allocation8], %s829_s0, %s829_s0, %s830_s2  }
 0x35f   :  { %808 = dma.done.wait [#allocation8], 1024  }
 0x360   :  { %809 = vsyncadd [#allocation8], 4294966272 }
 0x361   :  { %611 = vsyncpa [#allocation7], 1 }
 0x362   :  { %612 = vsyncpa [#allocation10], 1 }
 0x363   :  { %613 = vsyncpa [#allocation8], 1 }

</bundles_post_ra>
